<compile_context>
chip_gen: v6e
topology: v6e:2x2x1
jax: 0.10.0
libtpu: 0.0.40
codegen_flags: <defaults>
</compile_context>

<pallas_src>
import jax
import jax.numpy as jnp
from jax import lax
from jax.experimental import pallas as pl
from jax.experimental.pallas import tpu as pltpu


def _round_up(x, m):
    return -(-x // m) * m


def _svm_kernel(seq_ref, w_ref, out_ref):
    # out_t[2, TB] = W[2, L] contracted with seq_tile[TB, L] over L.
    # Same structure as the flash-attention q @ k.T contraction (both operands
    # carry the contraction on their last/lane dim), which the MXU consumes
    # without transposing the big seq tile.  Lane-dense [2, TB] stores.
    out_ref[...] = lax.dot_general(
        w_ref[...],
        seq_ref[...],
        dimension_numbers=(((1,), (1,)), ((), ())),
        preferred_element_type=jnp.float32,
    )


def _vmem_capacity_bytes():
    try:
        return int(pltpu.get_tpu_info().vmem_capacity_bytes)
    except Exception:
        return 64 * 1024 * 1024  # v7x-safe fallback (v5e/v6e have 128 MiB)


def _choose_batch_tile(B, L, itemsize, vmem_cap):
    """Batch-tile rows, sized by VMEM *footprint* (lane-padded), not raw bytes."""
    lane_l = _round_up(L, 128)
    # Double-buffered VMEM bytes contributed per batch row:
    #   seq block row  : lane-padded L                    -> lane_l * itemsize
    #   out block "row": 8 sublanes of one f32 lane column -> 32 B
    per_row = 2 * lane_l * itemsize + 2 * 32
    budget = vmem_cap // 2  # other half: weight blocks, Mosaic scratch, headroom
    max_rows = max((budget // per_row) // 128 * 128, 128)
    # TODO(synk): for extreme L (a single 128-row block exceeding VMEM) this
    # needs K-axis tiling with an accumulator; out of scope for seq_length-
    # sized linear layers.

    if B <= max_rows:
        if B <= 256:
            return B  # tiny batch: one full-array block (block == array dims is legal)
        # Prefer >= 2 grid blocks so the "parallel" axis can feed both v7x TCs.
        half = _round_up(-(-B // 2), 128)
        return min(half, max_rows)
    return max_rows


def svm_forward(seq, weight, bias, Gdata=None):
    """seq: [B, L]; weight: [2, L] (PyTorch nn.Linear layout); bias: [2].

    Returns seq.float() @ weight.T + bias as [B, 2] float32 (reference
    semantics); bf16/f16 seq goes to the MXU directly with f32 accumulation.
    """
    del Gdata  # accepted but unused, as in the reference forward
    B, L = seq.shape
    if seq.dtype not in (jnp.float32, jnp.bfloat16, jnp.float16):
        seq = seq.astype(jnp.float32)  # reference does seq.float()
    w = weight.astype(seq.dtype)
    itemsize = seq.dtype.itemsize

    vmem_cap = _vmem_capacity_bytes()
    tb = _choose_batch_tile(B, L, itemsize, vmem_cap)
    n_blocks = pl.cdiv(B, tb)

    # Explicit scoped-VMEM limit sized to the actual double-buffered block
    # footprints (+ slack) instead of the 16/32 MiB defaults.
    lane_l = _round_up(L, 128)
    seq_blk = _round_up(tb, 16) * lane_l * itemsize
    out_blk = 8 * _round_up(tb, 128) * 4
    w_blk = 8 * lane_l * itemsize
    vmem_limit = int(min(vmem_cap, 2 * (seq_blk + out_blk + w_blk) + (8 << 20)))

    out_t = pl.pallas_call(
        _svm_kernel,
        out_shape=jax.ShapeDtypeStruct((2, B), jnp.float32),
        grid=(n_blocks,),
        in_specs=[
            # seq batch tile, pipelined over the grid.  No wrapper pad: the
            # ragged tail block's garbage columns are never written back.
            pl.BlockSpec((tb, L), lambda i: (i, 0)),
            # weight: same block every step -> resident across the grid.
            pl.BlockSpec((2, L), lambda i: (0, 0)),
        ],
        out_specs=pl.BlockSpec((2, tb), lambda i: (0, i)),  # lane-dense [2, TB]
        compiler_params=pltpu.CompilerParams(
            dimension_semantics=("parallel",),
            vmem_limit_bytes=vmem_limit,
        ),
        cost_estimate=pl.CostEstimate(
            flops=4 * B * L,
            transcendentals=0,
            bytes_accessed=B * L * itemsize + 2 * L * itemsize + 2 * B * 4,
        ),
    )(seq, w)

    # [2, B] -> [B, 2]; bias folded outside the kernel (XLA fuses the add).
    return out_t.T + bias.astype(jnp.float32)


if __name__ == "__main__":
    key = jax.random.PRNGKey(0)
    k_seq, k_w, k_b, k_g = jax.random.split(key, 4)

    batch = 2
    seq_length = 8  # args.seq_length

    # Input sequence (the reference casts to float, so start from f32 here).
    seq = jax.random.normal(k_seq, (batch, seq_length), dtype=jnp.float32)
    # Gdata is accepted but unused by the forward pass.
    Gdata = jax.random.normal(k_g, (batch, 4), dtype=jnp.float32)

    # Deterministic nn.Linear-style init: U(-1/sqrt(in), 1/sqrt(in)).
    bound = 1.0 / jnp.sqrt(jnp.float32(seq_length))
    weight = jax.random.uniform(k_w, (2, seq_length), jnp.float32, -bound, bound)
    bias = jax.random.uniform(k_b, (2,), jnp.float32, -bound, bound)

    out = svm_forward(seq, weight, bias, Gdata)
    out = jax.block_until_ready(out)

    # Cross-check against plain JAX reference of the PyTorch module.
    ref = seq.astype(jnp.float32) @ weight.T + bias
    assert out.shape == (batch, 2), out.shape
    assert out.dtype == jnp.float32
    assert jnp.allclose(out, ref, atol=1e-5, rtol=1e-5)

    print("KERNEL_OK")
</pallas_src>

<mosaic_0001>
module attributes {stable_mosaic.version = 11 : i64} {
  func.func @_svm_kernel(%arg0: i32, %arg1: memref<2x8xf32, #tpu.memory_space<vmem>>, %arg2: memref<2x8xf32, #tpu.memory_space<vmem>>, %arg3: memref<2x2xf32, #tpu.memory_space<vmem>>) attributes {dimension_semantics = [#tpu.dimension_semantics<parallel>], iteration_bounds = array<i64: 1>, scalar_prefetch = 0 : i64, scratch_operands = 0 : i64, tpu.core_type = #tpu.core_type<tc>, window_params = [{transform_indices = @transform_0, window_bounds = array<i64: 2, 8>}, {pipeline_mode = #tpu.pipeline_mode<synchronous>, transform_indices = @transform_1, window_bounds = array<i64: 2, 8>}, {transform_indices = @transform_2, window_bounds = array<i64: 2, 2>}]} {
    %c0 = arith.constant 0 : index
    %c0_0 = arith.constant 0 : index
    %0 = vector.load %arg2[%c0, %c0_0] : memref<2x8xf32, #tpu.memory_space<vmem>>, vector<2x8xf32>
    %c0_1 = arith.constant 0 : index
    %c0_2 = arith.constant 0 : index
    %1 = vector.load %arg1[%c0_1, %c0_2] : memref<2x8xf32, #tpu.memory_space<vmem>>, vector<2x8xf32>
    %cst = arith.constant dense<0.000000e+00> : vector<2x2xf32>
    %2 = tpu.matmul %0, %1, %cst {dimension_numbers = #tpu.dot_dimension_numbers<[1], [1], [0], [0], [0, 0, 1, 0], [], []>} : vector<2x8xf32>, vector<2x8xf32>, vector<2x2xf32> -> vector<2x2xf32>
    %c0_3 = arith.constant 0 : index
    %c0_4 = arith.constant 0 : index
    %3 = vector.load %arg3[%c0_3, %c0_4] : memref<2x2xf32, #tpu.memory_space<vmem>>, vector<2x2xf32>
    tpu.vector_store %arg3[%c0_3, %c0_4], %2 {strides = array<i32>} : memref<2x2xf32, #tpu.memory_space<vmem>>, vector<2x2xf32>,
    return
  }
  func.func @transform_0(%arg0: i32) -> (i32, i32) {
    %c0_i32 = arith.constant 0 : i32
    %c0_i32_0 = arith.constant 0 : i32
    return %arg0, %c0_i32 : i32, i32
  }
  func.func @transform_1(%arg0: i32) -> (i32, i32) {
    %c0_i32 = arith.constant 0 : i32
    %c0_i32_0 = arith.constant 0 : i32
    %c0_i32_1 = arith.constant 0 : i32
    return %c0_i32, %c0_i32_0 : i32, i32
  }
  func.func @transform_2(%arg0: i32) -> (i32, i32) {
    %c0_i32 = arith.constant 0 : i32
    %c0_i32_0 = arith.constant 0 : i32
    return %c0_i32, %arg0 : i32, i32
  }
}

</mosaic_0001>

<bundles_post_ra>
// kernel: tpu_custom_call.1
= control target key start
LH: loop header
LB: loop body
LE: loop exit
PB: predicated region body
PF: predicated region fallthrough
CT: control target
= control target key end

     0   :  { %7 = vsyncpa [#allocation3], 0  ;;  %s242_s0 = inlined_call_operand.hbm [shape: f32[2,8], index: 0, kind: input, shape index: {}]   ;;  %s243_s1 = inlined_call_operand.hbm [shape: f32[2,8], index: 1, kind: input, shape index: {}]   ;;  %s244_s2 = inlined_call_operand.hbm [shape: f32[2,2], index: 2, kind: output, shape index: {}]  }
   0x1   :  { %8 = vsyncpa [#allocation6], 0 }
   0x2   :  { %9 = vsyncpa [#allocation4], 0  ;;  %s213_s9 = smov [#allocation2]   ;;  %s214_s11 = smov [#allocation5]  }
   0x3   :  { %s16_s10 = sshll.u32 %s213_s9, 4  ;;  %s26_s12 = sshll.u32 %s214_s11, 4  ;;  %s17_s10 = int_to_ptr.vmem [resolvable:$true] %s16_s10  ;;  %s27_s12 = int_to_ptr.vmem [resolvable:$true] %s26_s12 }
   0x4   :  { %s155_s13 = scalar_lea.vmem %s17_s10, 32  ;;  %p160_p1 = scmp.lt.s32.totalorder %s17_s10, %s17_s10 }
   0x5   :  { %p156_p0 = scmp.ne.s32.totalorder %s17_s10, %s155_s13  ;;  %p161_p2 = scmp.lt.s32.totalorder %s155_s13, %s155_s13 }
   0x7   :  { %p162_p3 = por %p161_p2, %p160_p1 }
   0x9   :  { %p163_p4 = pnand %p162_p3, %p156_p0 }
   0xb   :  { %166 = shalt.err (!%p163_p4)
}
   0xc   :  { %19 = dma.hbm_to_vmem [thread:$0]  %s242_s0, 32, %s17_s10, [#allocation3]  }
   0xd   :  { %s175_s16 = scalar_lea.vmem %s27_s12, 32  ;;  %p180_p6 = scmp.lt.s32.totalorder %s27_s12, %s27_s12 }
   0xe   :  { %p176_p5 = scmp.ne.s32.totalorder %s27_s12, %s175_s16  ;;  %p181_p7 = scmp.lt.s32.totalorder %s175_s16, %s175_s16 }
  0x10   :  { %p182_p8 = por %p181_p7, %p180_p6 }
  0x12   :  { %p183_p9 = pnand %p182_p8, %p176_p5 }
  0x14   :  { %186 = shalt.err (!%p183_p9)
}
  0x15   :  { %29 = dma.hbm_to_vmem [thread:$0]  %s243_s1, 32, %s27_s12, [#allocation6]  }
  0x16   :  { %207 = dma.done.wait [#allocation3], 32  }
  0x17   :  { %208 = vsyncadd [#allocation3], 4294967264 }
  0x18   :  { %209 = dma.done.wait [#allocation6], 32  }
  0x19   :  { %210 = vsyncadd [#allocation6], 4294967264  ;;  %v215_v0 = vmov 0.0   ;;  %vm216_vm0 = vmmov 0   ;;  %vm38_vm1 = vcmask 64512   ;;  %s217_s0 = smov [#allocation7]  }
  0x1a   :  { %137 = vmatprep.subr.mxu0 %v215_v0  ;;  %139 = vmatprep.mubr.msk.f32.mxu0 %vm216_vm0, %v215_v0  ;;  %v37_v1 = vld [vmem:[#allocation2] sm:$0x3]  ;;  %v36_v2 = vld [vmem:[#allocation5] sm:$0x3]  ;;  %s123_s19 = sshll.u32 %s217_s0, 4  ;;  %vm115_vm2 = vcmask 9216   ;;  %s124_s19 = int_to_ptr.vmem [resolvable:$true] %s123_s19 }
  0x1b   :  { %138 = vmatpush3.xpose.msk.msra.mxu0 %vm38_vm1, %v37_v1  ;;  %s187_s1 = scalar_lea.vmem %s124_s19, 32  ;;  %p192_p11 = scmp.lt.s32.totalorder %s124_s19, %s124_s19 }
  0x1c   :  { %p188_p10 = scmp.ne.s32.totalorder %s124_s19, %s187_s1  ;;  %p193_p12 = scmp.lt.s32.totalorder %s187_s1, %s187_s1 }
  0x1e   :  { %140 = vmatmul.mubr.msk.f32.vlgmr.msra.gmra.mxu0 %vm38_vm1, %v36_v2  ;;  %p194_p13 = por %p193_p12, %p192_p11 }
  0x20   :  { %p195_p0 = pnand %p194_p13, %p188_p10 }
  0xde   :  { %v111_v3 = vpop.f32.mrf.mxu0 }
  0xdf   :  { %116 = vst.msk [vmem:[#allocation7] sm:$0x3] %vm115_vm2, %v111_v3 }
  0xe0   :  { %v141_v4 = vpop.f32.mrf.mxu0 }
  0xe1   :  { %198 = shalt.err (!%p195_p0)
}
  0xe2   :  { %126 = dma.vmem_to_hbm [thread:$0]  %s124_s19, 32, %s244_s2, [#allocation4]  }
  0xe3   :  { %211 = dma.done.wait [#allocation4], 32  }
  0xe4   :  { %212 = vsyncadd [#allocation4], 4294967264 }
  0xe5   :  { %130 = vsyncpa [#allocation3], 1 }
  0xe6   :  { %131 = vsyncpa [#allocation6], 1 }
  0xe7   :  { %132 = vsyncpa [#allocation4], 1 }

</bundles_post_ra>
